<compile_context>
chip_gen: v7x
topology: tpu7x:2x2x1
jax: 0.10.0
libtpu: 0.0.40
codegen_flags: <defaults>
</compile_context>

<pallas_src>
import math

import jax
import jax.numpy as jnp
from jax import lax
from jax.experimental import pallas as pl
from jax.experimental.pallas import tpu as pltpu


def _round_up(x, m):
    return ((x + m - 1) // m) * m


# ----------------------------------------------------------------------------
# Generic tiled matmul + bias kernel (used for x-projection and lm_head)
# ----------------------------------------------------------------------------
def _matmul_bias_kernel(x_ref, w_ref, b_ref, o_ref):
    o_ref[...] = (
        jnp.dot(x_ref[...], w_ref[...], preferred_element_type=jnp.float32)
        + b_ref[...]
    ).astype(o_ref.dtype)


def matmul_bias(x, w, b, *, tm=256, tn=512):
    """out[M, N] = x[M, K] @ w[K, N] + b[1, N]   (full-K blocks, M/N tiled)."""
    M, K = x.shape
    N = w.shape[1]
    tm = min(tm, _round_up(M, 8))
    tn = min(tn, _round_up(N, 128))
    Mp, Np = _round_up(M, tm), _round_up(N, tn)
    if Mp != M:
        x = jnp.pad(x, ((0, Mp - M), (0, 0)))
    if Np != N:
        w = jnp.pad(w, ((0, 0), (0, Np - N)))
        b = jnp.pad(b, ((0, 0), (0, Np - N)))

    out = pl.pallas_call(
        _matmul_bias_kernel,
        out_shape=jax.ShapeDtypeStruct((Mp, Np), jnp.float32),
        grid_spec=pltpu.PrefetchScalarGridSpec(
            num_scalar_prefetch=0,
            grid=(Mp // tm, Np // tn),
            in_specs=[
                pl.BlockSpec((tm, K), lambda i, j: (i, 0)),
                pl.BlockSpec((K, tn), lambda i, j: (0, j)),
                pl.BlockSpec((1, tn), lambda i, j: (0, j)),
            ],
            out_specs=pl.BlockSpec((tm, tn), lambda i, j: (i, j)),
        ),
        compiler_params=pltpu.CompilerParams(
            dimension_semantics=("parallel", "parallel")),
    )(x, w, b)
    return out[:M, :N]


# ----------------------------------------------------------------------------
# Sequential GRU recurrence kernel (only h-dependent work inside the loop)
# ----------------------------------------------------------------------------
def _gru_recurrence_kernel(xproj_ref, h0_ref, wzr_ref, whh_ref,
                           hidden_ref, h_scratch):
    # xproj_ref : (TC, Bp, 3*Hp)  precomputed x-part with biases folded in
    # h0_ref    : (Bp, Hp)
    # wzr_ref   : (Hp, 2*Hp)      [Wz_h | Wr_h]
    # whh_ref   : (Hp, Hp)
    # hidden_ref: (TC, Bp, Hp)    per-step hidden states (output)
    # h_scratch : (Bp, Hp)        carries h across T-chunks (grid iterations)
    TC = xproj_ref.shape[0]
    Hp = whh_ref.shape[0]

    @pl.when(pl.program_id(0) == 0)
    def _():
        h_scratch[...] = h0_ref[...]

    def step(t, h):
        xt = xproj_ref[t]                       # (Bp, 3*Hp)
        xz = xt[:, :Hp]
        xr = xt[:, Hp:2 * Hp]
        xh = xt[:, 2 * Hp:]

        # fused z/r gate matmul on the hidden state
        zr = jnp.dot(h, wzr_ref[...], preferred_element_type=jnp.float32)
        z = jax.nn.sigmoid(xz + zr[:, :Hp])
        r = jax.nn.sigmoid(xr + zr[:, Hp:])
        hbar = jnp.tanh(
            xh + jnp.dot(r * h, whh_ref[...], preferred_element_type=jnp.float32))
        h_new = (1.0 - z) * h + z * hbar
        hidden_ref[t] = h_new.astype(hidden_ref.dtype)
        return h_new

    # h stays a vreg-resident loop carry within the chunk; unrolled for LLO.
    h_final = lax.fori_loop(0, TC, step, h_scratch[...], unroll=True)
    h_scratch[...] = h_final


# ----------------------------------------------------------------------------
# Forward pass wrapper
# ----------------------------------------------------------------------------
def rnn_forward(idx, params, targets=None):
    table = params["lookup_table"]                   # (V, E)
    B, T = idx.shape
    E = table.shape[1]
    H = params["wz_h"].shape[0]
    V = params["w_head"].shape[1]

    Hp = _round_up(H, 128)
    Bp = _round_up(B, 8)
    Vp = _round_up(V, 128)
    TC = min(T, 16)                                  # timesteps per grid chunk
    Tp = _round_up(T, TC)

    def padw(w, r, c):
        return jnp.pad(w, ((0, r - w.shape[0]), (0, c - w.shape[1])))

    # --- one-time weight packing / padding (plain-JAX prep) ---
    wx = jnp.concatenate([padw(params["wz_x"], E, Hp),
                          padw(params["wr_x"], E, Hp),
                          padw(params["wh_x"], E, Hp)], axis=1)      # (E, 3Hp)
    bx = jnp.concatenate([padw(params["bz"], 1, Hp),
                          padw(params["br"], 1, Hp),
                          padw(params["bh"], 1, Hp)], axis=1)        # (1, 3Hp)
    wzr_h = jnp.concatenate([padw(params["wz_h"], Hp, Hp),
                             padw(params["wr_h"], Hp, Hp)], axis=1)  # (Hp, 2Hp)
    whh = padw(params["wh_h"], Hp, Hp)                               # (Hp, Hp)
    whead = padw(params["w_head"], Hp, Vp)                           # (Hp, Vp)
    bhead = padw(params["b_head"], 1, Vp)                            # (1, Vp)
    h0 = jnp.broadcast_to(padw(params["start"], 1, Hp), (Bp, Hp))

    # --- embedding gather directly into time-major layout ---
    emb_tm = table[idx.T]                                            # (T, B, E)
    emb_tm = jnp.pad(emb_tm, ((0, Tp - T), (0, Bp - B), (0, 0)))     # (Tp, Bp, E)

    # Phase 1: parallel x-projection for all tokens (biases folded in)
    xproj = matmul_bias(emb_tm.reshape(Tp * Bp, E), wx, bx)          # (Tp*Bp, 3Hp)
    xproj_tm = xproj.reshape(Tp, Bp, 3 * Hp)

    # Phase 2: serial recurrence streamed over T-chunks
    hidden_tm = pl.pallas_call(
        _gru_recurrence_kernel,
        out_shape=jax.ShapeDtypeStruct((Tp, Bp, Hp), jnp.float32),
        grid_spec=pltpu.PrefetchScalarGridSpec(
            num_scalar_prefetch=0,
            grid=(Tp // TC,),
            in_specs=[
                pl.BlockSpec((TC, Bp, 3 * Hp), lambda c: (c, 0, 0)),
                pl.BlockSpec((Bp, Hp), lambda c: (0, 0)),
                pl.BlockSpec((Hp, 2 * Hp), lambda c: (0, 0)),
                pl.BlockSpec((Hp, Hp), lambda c: (0, 0)),
            ],
            out_specs=pl.BlockSpec((TC, Bp, Hp), lambda c: (c, 0, 0)),
            scratch_shapes=[pltpu.VMEM((Bp, Hp), jnp.float32)],
        ),
        compiler_params=pltpu.CompilerParams(
            dimension_semantics=("arbitrary",)),
    )(xproj_tm, h0, wzr_h, whh)

    # Phase 3: parallel lm_head over all tokens (V tiled lane-dense)
    logits_flat = matmul_bias(hidden_tm.reshape(Tp * Bp, Hp), whead, bhead)
    logits = logits_flat.reshape(Tp, Bp, Vp)[:T, :B, :V]
    logits = jnp.transpose(logits, (1, 0, 2))                        # (B, T, V)

    loss = None
    if targets is not None:
        lf = logits.reshape(-1, V)
        tf = targets.reshape(-1)
        valid = tf != -1
        tsafe = jnp.where(valid, tf, 0)
        logz = jax.nn.logsumexp(lf, axis=-1)
        picked = jnp.take_along_axis(lf, tsafe[:, None], axis=-1)[:, 0]
        nll = jnp.where(valid, logz - picked, 0.0)
        loss = nll.sum() / jnp.maximum(valid.sum(), 1).astype(jnp.float32)
    return logits, loss


# ----------------------------------------------------------------------------
# Pure-JAX reference (mirrors the PyTorch forward) for validation
# ----------------------------------------------------------------------------
def rnn_forward_ref(idx, params):
    emb = params["lookup_table"][idx]                 # (B, T, E)
    B, T, E = emb.shape
    H = params["start"].shape[1]
    h = jnp.broadcast_to(params["start"], (B, H))
    hs = []
    for t in range(T):
        xt = emb[:, t, :]
        z = jax.nn.sigmoid(xt @ params["wz_x"] + h @ params["wz_h"] + params["bz"])
        r = jax.nn.sigmoid(xt @ params["wr_x"] + h @ params["wr_h"] + params["br"])
        hbar = jnp.tanh(xt @ params["wh_x"] + (r * h) @ params["wh_h"] + params["bh"])
        h = (1.0 - z) * h + z * hbar
        hs.append(h)
    hidden = jnp.stack(hs, axis=1)                    # (B, T, H)
    logits = hidden @ params["w_head"] + params["b_head"]
    return logits


# ----------------------------------------------------------------------------
# Deterministic parameter init (same shapes as the PyTorch module __init__)
# ----------------------------------------------------------------------------
def init_params(key, vocab_size, n_embd, n_embd2):
    E, H, V = n_embd, n_embd2, vocab_size
    keys = jax.random.split(key, 10)
    k_in = 1.0 / jnp.sqrt(jnp.float32(E + H))
    k_head = 1.0 / jnp.sqrt(jnp.float32(H))

    def lin_w(k):   # (E+H, H), already (in, out) i.e. W.T of the torch Linear
        return jax.random.uniform(k, (E + H, H), jnp.float32, -k_in, k_in)

    wz = lin_w(keys[0]); wr = lin_w(keys[1]); wh = lin_w(keys[2])
    params = {
        "lookup_table": jax.random.normal(keys[3], (V, E), jnp.float32),
        "start": jnp.zeros((1, H), jnp.float32),
        "wz_x": wz[:E], "wz_h": wz[E:],
        "bz": jax.random.uniform(keys[4], (1, H), jnp.float32, -k_in, k_in),
        "wr_x": wr[:E], "wr_h": wr[E:],
        "br": jax.random.uniform(keys[5], (1, H), jnp.float32, -k_in, k_in),
        "wh_x": wh[:E], "wh_h": wh[E:],
        "bh": jax.random.uniform(keys[6], (1, H), jnp.float32, -k_in, k_in),
        "w_head": jax.random.uniform(keys[7], (H, V), jnp.float32, -k_head, k_head),
        "b_head": jax.random.uniform(keys[8], (1, V), jnp.float32, -k_head, k_head),
    }
    return params


if __name__ == "__main__":
    B, T = 2, 8                    # batch, block_size (sequence length)
    vocab_size, n_embd, n_embd2 = 32, 16, 32

    key = jax.random.PRNGKey(0)
    kp, ki, kt = jax.random.split(key, 3)
    params = init_params(kp, vocab_size, n_embd, n_embd2)

    idx = jax.random.randint(ki, (B, T), 0, vocab_size, dtype=jnp.int32)
    targets = jax.random.randint(kt, (B, T), 0, vocab_size, dtype=jnp.int32)
    targets = targets.at[0, 0].set(-1)   # exercise ignore_index=-1 path

    logits, loss = rnn_forward(idx, params, targets)
    logits = jax.block_until_ready(logits)
    loss = jax.block_until_ready(loss)

    ref_logits = rnn_forward_ref(idx, params)
    assert logits.shape == (B, T, vocab_size)
    assert jnp.allclose(logits, ref_logits, atol=1e-4, rtol=1e-4), "mismatch vs reference"
    assert jnp.isfinite(loss)

    print("KERNEL_OK")
</pallas_src>

<mosaic_0001>
module attributes {stable_mosaic.version = 11 : i64} {
  func.func @_matmul_bias_kernel(%arg0: i32, %arg1: i32, %arg2: memref<64x16xf32, #tpu.memory_space<vmem>>, %arg3: memref<16x384xf32, #tpu.memory_space<vmem>>, %arg4: memref<1x384xf32, #tpu.memory_space<vmem>>, %arg5: memref<64x384xf32, #tpu.memory_space<vmem>>) attributes {dimension_semantics = [#tpu.dimension_semantics<parallel>, #tpu.dimension_semantics<parallel>], iteration_bounds = array<i64: 1, 1>, scalar_prefetch = 0 : i64, scratch_operands = 0 : i64, tpu.core_type = #tpu.core_type<tc>, window_params = [{transform_indices = @transform_0, window_bounds = array<i64: 64, 16>}, {transform_indices = @transform_1, window_bounds = array<i64: 16, 384>}, {transform_indices = @transform_2, window_bounds = array<i64: 1, 384>}, {transform_indices = @transform_3, window_bounds = array<i64: 64, 384>}]} {
    %c0 = arith.constant 0 : index
    %c0_0 = arith.constant 0 : index
    %0 = vector.load %arg2[%c0, %c0_0] : memref<64x16xf32, #tpu.memory_space<vmem>>, vector<64x16xf32>
    %c0_1 = arith.constant 0 : index
    %c0_2 = arith.constant 0 : index
    %1 = vector.load %arg3[%c0_1, %c0_2] : memref<16x384xf32, #tpu.memory_space<vmem>>, vector<16x384xf32>
    %cst = arith.constant dense<0.000000e+00> : vector<64x384xf32>
    %2 = tpu.matmul %0, %1, %cst {dimension_numbers = #tpu.dot_dimension_numbers<[1], [0], [0], [1], [0, 0, 1, 1], [], []>} : vector<64x16xf32>, vector<16x384xf32>, vector<64x384xf32> -> vector<64x384xf32>
    %c0_3 = arith.constant 0 : index
    %c0_4 = arith.constant 0 : index
    %3 = vector.load %arg4[%c0_3, %c0_4] : memref<1x384xf32, #tpu.memory_space<vmem>>, vector<1x384xf32>
    %4 = vector.broadcast %3 : vector<1x384xf32> to vector<64x384xf32>
    %5 = arith.addf %2, %4 : vector<64x384xf32>
    %c0_5 = arith.constant 0 : index
    %c0_6 = arith.constant 0 : index
    %6 = vector.load %arg5[%c0_5, %c0_6] : memref<64x384xf32, #tpu.memory_space<vmem>>, vector<64x384xf32>
    tpu.vector_store %arg5[%c0_5, %c0_6], %5 {strides = array<i32>} : memref<64x384xf32, #tpu.memory_space<vmem>>, vector<64x384xf32>,
    return
  }
  func.func @transform_0(%arg0: i32, %arg1: i32) -> (i32, i32) {
    %c0_i32 = arith.constant 0 : i32
    %c0_i32_0 = arith.constant 0 : i32
    return %arg0, %c0_i32 : i32, i32
  }
  func.func @transform_1(%arg0: i32, %arg1: i32) -> (i32, i32) {
    %c0_i32 = arith.constant 0 : i32
    %c0_i32_0 = arith.constant 0 : i32
    return %c0_i32, %arg1 : i32, i32
  }
  func.func @transform_2(%arg0: i32, %arg1: i32) -> (i32, i32) {
    %c0_i32 = arith.constant 0 : i32
    %c0_i32_0 = arith.constant 0 : i32
    return %c0_i32, %arg1 : i32, i32
  }
  func.func @transform_3(%arg0: i32, %arg1: i32) -> (i32, i32) {
    %c0_i32 = arith.constant 0 : i32
    return %arg0, %arg1 : i32, i32
  }
}

</mosaic_0001>

<bundles_post_ra>
// kernel: tpu_custom_call.1
= control target key start
LH: loop header
LB: loop body
LE: loop exit
PB: predicated region body
PF: predicated region fallthrough
CT: control target
= control target key end

     0   :  { %v409_v5 = vmov 0.0   ;;  %vm46_vm0 = vcmask 130048   ;;  %s526_s0 = inlined_call_operand.vmem [shape: f32[64,16], index: 0, kind: input, shape index: {}]   ;;  %s527_s1 = inlined_call_operand.vmem [shape: f32[16,384], index: 1, kind: input, shape index: {}]   ;;  %s528_s2 = inlined_call_operand.vmem [shape: f32[1,384], index: 2, kind: input, shape index: {}]   ;;  %s529_s3 = inlined_call_operand.hbm [shape: f32[64,384], index: 3, kind: output, shape index: {}]  }
   0x1   :  { %v24_v0 = vld [vmem:[%s527_s1 + $0x8] sm:$0xff]  ;;  %v27_v1 = vld [vmem:[%s527_s1 + $0x20] sm:$0xff]  ;;  %v26_v4 = vld [vmem:[%s527_s1 + $0x18] sm:$0xff]  ;;  %135 = vmatprep.mubr.f32.mxu0 %v409_v5  ;;  %171 = vmatprep.mubr.f32.mxu1 %v409_v5 }
   0x2   :  { %v23_v2 = vld [vmem:[%s527_s1] sm:$0xff]  ;;  %v371_v3 = vpack.c.bf16 %v27_v1, %v24_v0  ;;  %v25_v7 = vld [vmem:[%s527_s1 + $0x10] sm:$0xff]  ;;  %v28_v8 = vld [vmem:[%s527_s1 + $0x28] sm:$0xff] }
   0x3   :  { %v373_v6 = vpack.c.bf16 %v26_v4, %v23_v2  ;;  %v375_v9 = vpack.c.bf16 %v28_v8, %v25_v7  ;;  %v15_v10 = vld [vmem:[%s526_s0] sm:$0xff]  ;;  %v21_v11 = vld [vmem:[%s526_s0 + $0x30] sm:$0xff] }
   0x4   :  { %372 = vmatprep.subr.bf16.mxu0 %v371_v3  ;;  %379 = vmatprep.subr.bf16.mxu1 %v371_v3 }
   0x5   :  { %374 = vmatpush1.bf16.msra.mxu0 %v373_v6  ;;  %380 = vmatpush1.bf16.msra.mxu1 %v373_v6 }
   0x6   :  { %376 = vmatprep.subr.bf16.mxu1 %v375_v9 }
   0x7   :  { %8 = vsyncpa [#allocation3], 0  ;;  %v16_v12 = vld [vmem:[%s526_s0 + $0x8] sm:$0xff]  ;;  %v22_v13 = vld [vmem:[%s526_s0 + $0x38] sm:$0xff]  ;;  %v31_v18 = vlaneseq }
   0x8   :  { %329 = vmatmul.mubr.msk.f32.vlgmr.msra.gmra.mrb[0].mxu0 %vm46_vm0, %v15_v10  ;;  %335 = vmatmul.mubr.msk.f32.vlgmr.msra.gmra.mrb[0].mxu1 %vm46_vm0, %v21_v11  ;;  %v17_v14 = vld [vmem:[%s526_s0 + $0x10] sm:$0xff]  ;;  %v18_v15 = vld [vmem:[%s526_s0 + $0x18] sm:$0xff]  ;;  %v19_v16 = vld [vmem:[%s526_s0 + $0x20] sm:$0xff] }
   0x9   :  { %378 = vmatpush3.bf16.msra.mxu1 %v375_v9  ;;  %141 = vmatprep.mubr.f32.mxu0 %v409_v5  ;;  %v20_v17 = vld [vmem:[%s526_s0 + $0x28] sm:$0xff]  ;;  %v32_v19 = vshrl.u32 %v31_v18, 7  ;;  %v29_v21 = vld [vmem:[%s528_s2] sm:$0x7]  ;;  %s410_s0 = smov [#allocation2]  }
   0xa   :  { %177 = vmatprep.mubr.f32.mxu1 %v409_v5  ;;  %s318_s2 = sshll.u32 %s410_s0, 4  ;;  %s319_s2 = int_to_ptr.vmem [resolvable:$true] %s318_s2 }
   0xb   :  { %v33_v20 = vsub.s32 0, %v32_v19  ;;  %v37_v22 = vsub.s32 1, %v32_v19  ;;  %v41_v31 = vsub.s32 2, %v32_v19  ;;  %s385_s14 = scalar_lea.vmem %s319_s2, 3072  ;;  %p390_p1 = scmp.lt.s32.totalorder %s319_s2, %s319_s2 }
   0xc   :  { %330 = vmatmul.mubr.msk.f32.gmra.mrb[2].mxu0 %vm46_vm0, %v16_v12  ;;  %336 = vmatmul.mubr.msk.f32.gmra.mrb[2].mxu1 %vm46_vm0, %v22_v13  ;;  %p386_p0 = scmp.ne.s32.totalorder %s319_s2, %s385_s14  ;;  %p391_p2 = scmp.lt.s32.totalorder %s385_s14, %s385_s14 }
   0xd   :  { %147 = vmatprep.mubr.f32.mxu0 %v409_v5  ;;  %359 = vmatprep.mubr.msk.f32.mxu1 %vm46_vm0, %v15_v10  ;;  %v494_v23 = vrot.slane %v29_v21, %v33_v20  ;;  %v496_v24 = vrot.slane %v29_v21, %v37_v22  ;;  %v42_v40 = vrot.slane %v29_v21, %v41_v31 }
   0xe   :  { %p392_p3 = por %p391_p2, %p390_p1 }
  0x10   :  { %331 = vmatmul.mubr.msk.f32.gmra.mrb[4].mxu0 %vm46_vm0, %v17_v14  ;;  %360 = vmatmul.mubr.msk.f32.vlgmr.msra.gmra.mrb[4].mxu1 %vm46_vm0, %v16_v12  ;;  %p393_p4 = pnand %p392_p3, %p386_p0 }
  0x11   :  { %153 = vmatprep.mubr.f32.mxu0 %v409_v5  ;;  %362 = vmatprep.mubr.msk.f32.mxu1 %vm46_vm0, %v17_v14 }
  0x14   :  { %332 = vmatmul.mubr.msk.f32.gmra.mrb[6].mxu0 %vm46_vm0, %v18_v15  ;;  %363 = vmatmul.mubr.msk.f32.gmra.mrb[6].mxu1 %vm46_vm0, %v18_v15 }
  0x15   :  { %159 = vmatprep.mubr.f32.mxu0 %v409_v5  ;;  %365 = vmatprep.mubr.msk.f32.mxu1 %vm46_vm0, %v19_v16 }
  0x18   :  { %333 = vmatmul.mubr.msk.f32.gmra.mrb[8].mxu0 %vm46_vm0, %v19_v16  ;;  %366 = vmatmul.mubr.msk.f32.gmra.mrb[8].mxu1 %vm46_vm0, %v20_v17 }
  0x19   :  { %165 = vmatprep.mubr.f32.mxu0 %v409_v5  ;;  %368 = vmatprep.mubr.msk.f32.mxu1 %vm46_vm0, %v21_v11 }
  0x1c   :  { %334 = vmatmul.mubr.msk.f32.gmra.mrb[10].mxu0 %vm46_vm0, %v20_v17  ;;  %369 = vmatmul.mubr.msk.f32.gmra.mrb[10].mxu1 %vm46_vm0, %v22_v13 }
  0xdb   :  { %v137_v25 = vpop.f32.mrb[0].mxu0  ;;  %v173_v26 = vpop.f32.mrb[0].mxu1 }
  0xdc   :  { %v138_v27 = vadd.f32 %v137_v25, %v494_v23  ;;  %v174_v28 = vadd.f32 %v173_v26, %v494_v23  ;;  %v139_v29 = vpop.f32.mrb[1].mxu0  ;;  %v175_v30 = vpop.f32.mrb[1].mxu1 }
  0xdd   :  { %v140_v32 = vadd.f32 %v139_v29, %v496_v24  ;;  %v176_v33 = vadd.f32 %v175_v30, %v496_v24 }
  0xde   :  { %289 = vst [vmem:[#allocation2] sm:$0xff] %v138_v27  ;;  %307 = vst [vmem:[#allocation2 + $0x90] sm:$0xff] %v174_v28 }
  0xdf   :  { %290 = vst [vmem:[#allocation2 + $0x8] sm:$0xff] %v140_v32  ;;  %308 = vst [vmem:[#allocation2 + $0x98] sm:$0xff] %v176_v33  ;;  %v143_v34 = vpop.f32.mrb[2].mxu0  ;;  %v179_v35 = vpop.f32.mrb[2].mxu1 }
  0xe0   :  { %v144_v36 = vadd.f32 %v143_v34, %v494_v23  ;;  %v180_v37 = vadd.f32 %v179_v35, %v494_v23  ;;  %v145_v38 = vpop.f32.mrb[3].mxu0  ;;  %v181_v39 = vpop.f32.mrb[3].mxu1 }
  0xe1   :  { %v146_v41 = vadd.f32 %v145_v38, %v496_v24  ;;  %v182_v42 = vadd.f32 %v181_v39, %v496_v24 }
  0xe2   :  { %292 = vst [vmem:[#allocation2 + $0x18] sm:$0xff] %v144_v36  ;;  %310 = vst [vmem:[#allocation2 + $0xa8] sm:$0xff] %v180_v37 }
  0xe3   :  { %293 = vst [vmem:[#allocation2 + $0x20] sm:$0xff] %v146_v41  ;;  %311 = vst [vmem:[#allocation2 + $0xb0] sm:$0xff] %v182_v42  ;;  %v149_v43 = vpop.f32.mrb[4].mxu0  ;;  %v361_v44 = vpop.f32.mrb[4].mxu1 }
  0xe4   :  { %v150_v45 = vadd.f32 %v149_v43, %v494_v23  ;;  %v256_v46 = vadd.f32 %v361_v44, %v42_v40  ;;  %v151_v47 = vpop.f32.mrb[5].mxu0  ;;  %v250_v48 = vpop.f32.mrb[5].mxu1 }
  0xe5   :  { %v152_v49 = vadd.f32 %v151_v47, %v496_v24  ;;  %v251_v50 = vadd.f32 %v250_v48, %v42_v40 }
  0xe6   :  { %295 = vst [vmem:[#allocation2 + $0x30] sm:$0xff] %v150_v45  ;;  %294 = vst [vmem:[#allocation2 + $0x28] sm:$0xff] %v256_v46 }
  0xe7   :  { %296 = vst [vmem:[#allocation2 + $0x38] sm:$0xff] %v152_v49  ;;  %291 = vst [vmem:[#allocation2 + $0x10] sm:$0xff] %v251_v50  ;;  %v155_v51 = vpop.f32.mrb[6].mxu0  ;;  %v364_v52 = vpop.f32.mrb[6].mxu1 }
  0xe8   :  { %v156_v53 = vadd.f32 %v155_v51, %v494_v23  ;;  %v266_v54 = vadd.f32 %v364_v52, %v42_v40  ;;  %v157_v55 = vpop.f32.mrb[7].mxu0  ;;  %v260_v56 = vpop.f32.mrb[7].mxu1 }
  0xe9   :  { %v158_v57 = vadd.f32 %v157_v55, %v496_v24  ;;  %v261_v58 = vadd.f32 %v260_v56, %v42_v40 }
  0xea   :  { %298 = vst [vmem:[#allocation2 + $0x48] sm:$0xff] %v156_v53  ;;  %300 = vst [vmem:[#allocation2 + $0x58] sm:$0xff] %v266_v54 }
  0xeb   :  { %299 = vst [vmem:[#allocation2 + $0x50] sm:$0xff] %v158_v57  ;;  %297 = vst [vmem:[#allocation2 + $0x40] sm:$0xff] %v261_v58  ;;  %v161_v59 = vpop.f32.mrb[8].mxu0  ;;  %v367_v60 = vpop.f32.mrb[8].mxu1 }
  0xec   :  { %v162_v61 = vadd.f32 %v161_v59, %v494_v23  ;;  %v276_v62 = vadd.f32 %v367_v60, %v42_v40  ;;  %v163_v63 = vpop.f32.mrb[9].mxu0  ;;  %v270_v0 = vpop.f32.mrb[9].mxu1 }
  0xed   :  { %v164_v1 = vadd.f32 %v163_v63, %v496_v24  ;;  %v271_v2 = vadd.f32 %v270_v0, %v42_v40 }
  0xee   :  { %301 = vst [vmem:[#allocation2 + $0x60] sm:$0xff] %v162_v61  ;;  %306 = vst [vmem:[#allocation2 + $0x88] sm:$0xff] %v276_v62 }
  0xef   :  { %302 = vst [vmem:[#allocation2 + $0x68] sm:$0xff] %v164_v1  ;;  %303 = vst [vmem:[#allocation2 + $0x70] sm:$0xff] %v271_v2  ;;  %v167_v3 = vpop.f32.mrb[10].mxu0  ;;  %v370_v4 = vpop.f32.mrb[10].mxu1 }
  0xf0   :  { %v168_v5 = vadd.f32 %v167_v3, %v494_v23  ;;  %v286_v6 = vadd.f32 %v370_v4, %v42_v40  ;;  %v169_v7 = vpop.f32.mrb[11].mxu0  ;;  %v280_v8 = vpop.f32.mrb[11].mxu1 }
  0xf1   :  { %v170_v9 = vadd.f32 %v169_v7, %v496_v24  ;;  %v281_v10 = vadd.f32 %v280_v8, %v42_v40 }
  0xf2   :  { %304 = vst [vmem:[#allocation2 + $0x78] sm:$0xff] %v168_v5  ;;  %312 = vst [vmem:[#allocation2 + $0xb8] sm:$0xff] %v286_v6 }
  0xf3   :  { %305 = vst [vmem:[#allocation2 + $0x80] sm:$0xff] %v170_v9  ;;  %309 = vst [vmem:[#allocation2 + $0xa0] sm:$0xff] %v281_v10 }
  0xf4   :  { %396 = shalt.err (!%p393_p4)
}
  0xf5   :  { %s397_s17 = scalar_lea.hbm %s529_s3, 3072 }
  0xf6   :  { %p398_p5 = scmp.ne.s32.totalorder %s529_s3, %s397_s17  ;;  %p401_p6 = scmp.lt.u32.totalorder %s397_s17, %s529_s3 }
  0xf8   :  { %p403_p7 = pnand %p401_p6, %p398_p5 }
  0xfa   :  { %406 = shalt.err (!%p403_p7)
}
  0xfb   :  { %s411_s22 = smov 384   ;;  %s412_s23 = smov 24  }
  0xfc   :  { %324 = dma.vmem_to_hbm [thread:$0]  %s319_s2, 3072, %s529_s3, [#allocation3], %s411_s22, %s411_s22, %s412_s23  }
  0xfd   :  { %407 = dma.done.wait [#allocation3], 3072  }
  0xfe   :  { %408 = vsyncadd [#allocation3], 4294964224 }
  0xff   :  { %328 = vsyncpa [#allocation3], 1 }

</bundles_post_ra>
